<compile_context>
chip_gen: v6e
topology: v6e:2x2x1
jax: 0.10.0
libtpu: 0.0.40
codegen_flags: <defaults>
</compile_context>

<pallas_src>
from collections import namedtuple

import jax
import jax.numpy as jnp
from jax.experimental import pallas as pl
from jax.experimental.pallas import tpu as pltpu

BN_EPS = 1e-5

Plan = namedtuple("Plan", "tn hidden_pad out_tile out_pad vmem_limit use_acc")


def _round_up(x, m):
    return (x + m - 1) // m * m


def _vmem_capacity_bytes():
    """Generation-aware VMEM capacity with a conservative fallback."""
    try:
        cap = getattr(pltpu.get_tpu_info(), "vmem_capacity_bytes", None)
        if cap:
            return int(cap)
    except Exception:
        pass
    return 64 << 20  # conservative (v7x per-core VMEM)


def _plan_tiling(B, K, hidden_dim, output_dim, out_dtype, operand_dtype,
                 hidden_tile=None, out_tile=None):
    op_isz = jnp.dtype(operand_dtype).itemsize
    out_isz = jnp.dtype(out_dtype).itemsize
    use_acc = jnp.dtype(out_dtype) != jnp.dtype(jnp.float32)

    cap = _vmem_capacity_bytes()
    budget = max(cap - (12 << 20), 24 << 20)  # headroom for compiler scratch

    # Hidden tile: big tiles amortize per-step overhead and the accumulator
    # read-modify-write; 512 maps cleanly onto 2x256x256 / 4x128x128 MXUs.
    ht = 512 if hidden_tile is None else hidden_tile
    if hidden_dim <= ht:
        tn, hidden_pad = hidden_dim, hidden_dim
    else:
        tn = ht
        hidden_pad = _round_up(hidden_dim, tn)

    # Lane-dense output padding (unmasked full-lane vst), sliced off afterwards.
    if out_tile is None:
        out_pad = _round_up(output_dim, 128)
        ot = out_pad
    else:
        ot = _round_up(out_tile, 128)
        out_pad = _round_up(output_dim, ot)

    def vmem_est(tn_, ot_):
        return (2 * B * K * op_isz            # resident x (pipeline allocs 2 bufs)
                + 2 * K * tn_ * op_isz        # streamed W1^T tile (double buffered)
                + 2 * tn_ * ot_ * op_isz      # streamed W2^T tile (double buffered)
                + 2 * 2 * tn_ * 4             # packed gamma/beta tile
                + 2 * B * ot_ * out_isz       # resident output block
                + (B * ot_ * 4 if use_acc else 0))  # f32 acc (non-f32 outputs only)

    # Graceful fallback: shrink hidden tile first, then output tile, instead of
    # letting the compile fail with a limit below the actual requirement.
    while vmem_est(tn, ot) > budget:
        if tn > 256:
            tn = 256
            hidden_pad = _round_up(hidden_dim, tn)
        elif ot > 128:
            ot = max(128, (ot // 2) // 128 * 128)
            out_pad = _round_up(output_dim, ot)
        else:
            break

    est = vmem_est(tn, ot)
    vmem_limit = int(min(budget, max(32 << 20, 2 * est)))
    return Plan(tn, hidden_pad, ot, out_pad, vmem_limit, use_acc)


def prepare_mlp2_params(w1, w2, gamma, beta, *, hidden_pad, out_pad,
                        operand_dtype=None):
    """Pad/transpose weights and pack BN params once per weight set (hoistable)."""
    hidden_dim = w1.shape[0]
    output_dim = w2.shape[0]
    wdt = operand_dtype if operand_dtype is not None else w1.dtype

    w1t = w1.T.astype(wdt)                 # [K, H]  -> plain [M,K]x[K,N] in kernel
    w2t = w2.T.astype(wdt)                 # [H, N]
    dh = hidden_pad - hidden_dim
    dn = out_pad - output_dim
    if dh:
        w1t = jnp.pad(w1t, ((0, 0), (0, dh)))
        w2t = jnp.pad(w2t, ((0, dh), (0, 0)))
    if dn:
        w2t = jnp.pad(w2t, ((0, 0), (0, dn)))
    # gamma padded with 1 / beta with 0 so padded hidden features stay exactly 0
    # through BN + ReLU (padded W2 rows contribute 0 regardless).
    gb = jnp.stack([
        jnp.pad(gamma.astype(jnp.float32), (0, dh), constant_values=1.0),
        jnp.pad(beta.astype(jnp.float32), (0, dh)),
    ])                                     # [2, hidden_pad]
    return w1t, w2t, gb


def _make_mlp2_kernel(use_acc):
    def kernel(x_ref, w1_ref, w2_ref, gb_ref, o_ref, *scratch):
        # x_ref:  [B, K]          resident
        # w1_ref: [K, tn]         W1^T tile (streamed)
        # w2_ref: [tn, out_tile]  W2^T tile (streamed)
        # gb_ref: [2, tn] f32     packed (gamma, beta) tile
        # o_ref:  [B, out_tile]   resident output block (is the accumulator when f32)
        # scratch: ([B, out_tile] f32 acc) only when the output dtype is not f32
        acc_ref = scratch[0] if use_acc else o_ref
        j = pl.program_id(1)                      # hidden-tile (reduction) index

        @pl.when(j == 0)
        def _init():
            acc_ref[...] = jnp.zeros_like(acc_ref)

        # Linear 1 tile: [B, K] x [K, tn] -> f32 [B, tn] on the MXU.
        h = jnp.dot(x_ref[...], w1_ref[...], preferred_element_type=jnp.float32)

        # BatchNorm1d (training mode): one-pass biased batch statistics folded
        # into a single per-feature scale + shift, then ReLU (all f32).
        inv_b = 1.0 / h.shape[0]
        mean = jnp.sum(h, axis=0, keepdims=True) * inv_b
        var = jnp.sum(h * h, axis=0, keepdims=True) * inv_b - mean * mean
        var = jnp.maximum(var, 0.0)               # guard one-pass cancellation
        gb = gb_ref[...]
        scale = gb[0:1, :] * jax.lax.rsqrt(var + BN_EPS)   # rsqrt -> EUP slot
        shift = gb[1:2, :] - mean * scale
        h = jnp.maximum(h * scale + shift, 0.0)

        # Linear 2 tile: accumulate [B, tn] x [tn, out_tile] into the resident block.
        acc_ref[...] += jnp.dot(h.astype(w2_ref.dtype), w2_ref[...],
                                preferred_element_type=jnp.float32)

        if use_acc:
            @pl.when(j == pl.num_programs(1) - 1)
            def _finalize():
                o_ref[...] = acc_ref[...].astype(o_ref.dtype)

    return kernel


def mlp2_forward(x, w1, w2, gamma, beta, *, hidden_tile=None, out_tile=None,
                 operand_dtype=None):
    """x: [B, in]; w1: [hidden, in]; w2: [out, hidden]; gamma/beta: [hidden]."""
    B, input_dim = x.shape
    hidden_dim = w1.shape[0]
    output_dim = w2.shape[0]
    out_dtype = x.dtype
    op_dtype = jnp.dtype(operand_dtype) if operand_dtype is not None else jnp.dtype(x.dtype)

    plan = _plan_tiling(B, input_dim, hidden_dim, output_dim, out_dtype, op_dtype,
                        hidden_tile=hidden_tile, out_tile=out_tile)

    # NOTE: repeated callers should hoist/cache this (one-time pad + transpose).
    w1t, w2t, gb = prepare_mlp2_params(
        w1, w2, gamma, beta, hidden_pad=plan.hidden_pad, out_pad=plan.out_pad,
        operand_dtype=op_dtype)
    x_op = x.astype(op_dtype)

    tn, ot = plan.tn, plan.out_tile
    n_out = plan.out_pad // ot
    n_hid = plan.hidden_pad // tn
    scratch_shapes = [pltpu.VMEM((B, ot), jnp.float32)] if plan.use_acc else []

    out_padded = pl.pallas_call(
        _make_mlp2_kernel(plan.use_acc),
        out_shape=jax.ShapeDtypeStruct((B, plan.out_pad), out_dtype),
        grid_spec=pltpu.PrefetchScalarGridSpec(
            num_scalar_prefetch=0,
            grid=(n_out, n_hid),     # (output tiles | parallel, hidden reduction | arbitrary)
            in_specs=[
                pl.BlockSpec((B, input_dim), lambda i, j: (0, 0)),    # x resident
                pl.BlockSpec((input_dim, tn), lambda i, j: (0, j)),   # W1^T tile
                pl.BlockSpec((tn, ot), lambda i, j: (j, i)),          # W2^T tile
                pl.BlockSpec((2, tn), lambda i, j: (0, j)),           # gamma/beta tile
            ],
            out_specs=pl.BlockSpec((B, ot), lambda i, j: (0, i)),
            scratch_shapes=scratch_shapes,
        ),
        compiler_params=pltpu.CompilerParams(
            dimension_semantics=("parallel", "arbitrary"),
            vmem_limit_bytes=plan.vmem_limit),
    )(x_op, w1t, w2t, gb)

    return out_padded[:, :output_dim]


def mlp2_reference(x, w1, w2, gamma, beta):
    h = x @ w1.T
    mean = jnp.mean(h, axis=0, keepdims=True)
    var = jnp.mean((h - mean) ** 2, axis=0, keepdims=True)
    h = (h - mean) * jax.lax.rsqrt(var + BN_EPS) * gamma + beta
    h = jnp.maximum(h, 0.0)
    return h @ w2.T


if __name__ == "__main__":
    # Small shapes consistent with the module's forward: x is [batch, input_dim].
    batch, input_dim, hidden_dim, output_dim = 8, 16, 32, 8

    key = jax.random.PRNGKey(0)
    kx, kw1, kw2 = jax.random.split(key, 3)

    x = jax.random.normal(kx, (batch, input_dim), dtype=jnp.float32)
    # PyTorch-like kaiming-uniform-ish init bounds (no bias).
    bound1 = 1.0 / (input_dim ** 0.5)
    bound2 = 1.0 / (hidden_dim ** 0.5)
    w1 = jax.random.uniform(kw1, (hidden_dim, input_dim),
                            minval=-bound1, maxval=bound1, dtype=jnp.float32)
    w2 = jax.random.uniform(kw2, (output_dim, hidden_dim),
                            minval=-bound2, maxval=bound2, dtype=jnp.float32)
    # BatchNorm1d default affine init: weight=1, bias=0.
    gamma = jnp.ones((hidden_dim,), dtype=jnp.float32)
    beta = jnp.zeros((hidden_dim,), dtype=jnp.float32)

    ref = mlp2_reference(x, w1, w2, gamma, beta)

    # f32 path (accumulates directly into the output block; no acc scratch).
    out = mlp2_forward(x, w1, w2, gamma, beta)
    jax.block_until_ready(out)
    assert out.shape == (batch, output_dim)
    assert jnp.allclose(out, ref, atol=2e-4, rtol=2e-4), "mismatch vs reference (f32 path)"

    # bf16 operand path (f32 accumulation / f32 BN math): loose tolerance check.
    out_bf16 = mlp2_forward(x, w1, w2, gamma, beta, operand_dtype=jnp.bfloat16)
    jax.block_until_ready(out_bf16)
    assert out_bf16.shape == (batch, output_dim)
    assert float(jnp.max(jnp.abs(out_bf16 - ref))) < 0.2, "bf16 path too far from reference"

    print("KERNEL_OK")
</pallas_src>

<mosaic_0001>
module attributes {stable_mosaic.version = 11 : i64} {
  func.func @kernel(%arg0: i32, %arg1: i32, %arg2: memref<8x16xf32, #tpu.memory_space<vmem>>, %arg3: memref<16x32xf32, #tpu.memory_space<vmem>>, %arg4: memref<32x128xf32, #tpu.memory_space<vmem>>, %arg5: memref<2x32xf32, #tpu.memory_space<vmem>>, %arg6: memref<8x128xf32, #tpu.memory_space<vmem>>) attributes {dimension_semantics = [#tpu.dimension_semantics<parallel>, #tpu.dimension_semantics<arbitrary>], iteration_bounds = array<i64: 1, 1>, scalar_prefetch = 0 : i64, scratch_operands = 0 : i64, tpu.core_type = #tpu.core_type<tc>, window_params = [{pipeline_mode = #tpu.pipeline_mode<synchronous>, transform_indices = @transform_0, window_bounds = array<i64: 8, 16>}, {transform_indices = @transform_1, window_bounds = array<i64: 16, 32>}, {transform_indices = @transform_2, window_bounds = array<i64: 32, 128>}, {transform_indices = @transform_3, window_bounds = array<i64: 2, 32>}, {transform_indices = @transform_4, window_bounds = array<i64: 8, 128>}]} {
    %c0_i32 = arith.constant 0 : i32
    %0 = arith.cmpi eq, %arg1, %c0_i32 : i32
    %1 = arith.extui %0 : i1 to i32
    %c0_i32_0 = arith.constant 0 : i32
    %2 = arith.cmpi ne, %1, %c0_i32_0 : i32
    scf.if %2 {
      %cst_20 = arith.constant 0.000000e+00 : f32
      %39 = vector.broadcast %cst_20 : f32 to vector<8x128xf32>
      %c0_21 = arith.constant 0 : index
      %c0_22 = arith.constant 0 : index
      %40 = vector.load %arg6[%c0_21, %c0_22] : memref<8x128xf32, #tpu.memory_space<vmem>>, vector<8x128xf32>
      tpu.vector_store %arg6[%c0_21, %c0_22], %39 {strides = array<i32>} : memref<8x128xf32, #tpu.memory_space<vmem>>, vector<8x128xf32>,
    } else {
    }
    %c0 = arith.constant 0 : index
    %c0_1 = arith.constant 0 : index
    %3 = vector.load %arg2[%c0, %c0_1] : memref<8x16xf32, #tpu.memory_space<vmem>>, vector<8x16xf32>
    %c0_2 = arith.constant 0 : index
    %c0_3 = arith.constant 0 : index
    %4 = vector.load %arg3[%c0_2, %c0_3] : memref<16x32xf32, #tpu.memory_space<vmem>>, vector<16x32xf32>
    %cst = arith.constant dense<0.000000e+00> : vector<8x32xf32>
    %5 = tpu.matmul %3, %4, %cst {dimension_numbers = #tpu.dot_dimension_numbers<[1], [0], [0], [1], [0, 0, 1, 1], [], []>} : vector<8x16xf32>, vector<16x32xf32>, vector<8x32xf32> -> vector<8x32xf32>
    %cst_4 = arith.constant dense<0.000000e+00> : vector<32xf32>
    %6 = vector.multi_reduction <add>, %5, %cst_4 [0] : vector<8x32xf32> to vector<32xf32>
    %7 = vector.shape_cast %6 : vector<32xf32> to vector<1x32xf32>
    %cst_5 = arith.constant 1.250000e-01 : f32
    %8 = vector.broadcast %cst_5 : f32 to vector<1x32xf32>
    %9 = arith.mulf %7, %8 : vector<1x32xf32>
    %10 = arith.mulf %5, %5 : vector<8x32xf32>
    %cst_6 = arith.constant dense<0.000000e+00> : vector<32xf32>
    %11 = vector.multi_reduction <add>, %10, %cst_6 [0] : vector<8x32xf32> to vector<32xf32>
    %12 = vector.shape_cast %11 : vector<32xf32> to vector<1x32xf32>
    %cst_7 = arith.constant 1.250000e-01 : f32
    %13 = vector.broadcast %cst_7 : f32 to vector<1x32xf32>
    %14 = arith.mulf %12, %13 : vector<1x32xf32>
    %15 = arith.mulf %9, %9 : vector<1x32xf32>
    %16 = arith.subf %14, %15 : vector<1x32xf32>
    %cst_8 = arith.constant 0.000000e+00 : f32
    %17 = vector.broadcast %cst_8 : f32 to vector<1x32xf32>
    %18 = arith.maximumf %16, %17 : vector<1x32xf32>
    %c0_9 = arith.constant 0 : index
    %c0_10 = arith.constant 0 : index
    %19 = vector.load %arg5[%c0_9, %c0_10] : memref<2x32xf32, #tpu.memory_space<vmem>>, vector<2x32xf32>
    %20 = vector.extract_strided_slice %19 {offsets = [0, 0], sizes = [1, 32], strides = [1, 1]} : vector<2x32xf32> to vector<1x32xf32>
    %cst_11 = arith.constant 9.99999974E-6 : f32
    %21 = vector.broadcast %cst_11 : f32 to vector<1x32xf32>
    %22 = arith.addf %18, %21 : vector<1x32xf32>
    %23 = math.rsqrt %22 : vector<1x32xf32>
    %24 = arith.mulf %20, %23 : vector<1x32xf32>
    %25 = vector.extract_strided_slice %19 {offsets = [1, 0], sizes = [1, 32], strides = [1, 1]} : vector<2x32xf32> to vector<1x32xf32>
    %26 = arith.mulf %9, %24 : vector<1x32xf32>
    %27 = arith.subf %25, %26 : vector<1x32xf32>
    %28 = vector.broadcast %24 : vector<1x32xf32> to vector<8x32xf32>
    %29 = arith.mulf %5, %28 : vector<8x32xf32>
    %30 = vector.broadcast %27 : vector<1x32xf32> to vector<8x32xf32>
    %31 = arith.addf %29, %30 : vector<8x32xf32>
    %cst_12 = arith.constant 0.000000e+00 : f32
    %32 = vector.broadcast %cst_12 : f32 to vector<8x32xf32>
    %33 = arith.maximumf %31, %32 : vector<8x32xf32>
    %c0_13 = arith.constant 0 : index
    %c0_14 = arith.constant 0 : index
    %34 = vector.load %arg6[%c0_13, %c0_14] : memref<8x128xf32, #tpu.memory_space<vmem>>, vector<8x128xf32>
    %c0_15 = arith.constant 0 : index
    %c0_16 = arith.constant 0 : index
    %35 = vector.load %arg4[%c0_15, %c0_16] : memref<32x128xf32, #tpu.memory_space<vmem>>, vector<32x128xf32>
    %cst_17 = arith.constant dense<0.000000e+00> : vector<8x128xf32>
    %36 = tpu.matmul %33, %35, %cst_17 {dimension_numbers = #tpu.dot_dimension_numbers<[1], [0], [0], [1], [0, 0, 1, 1], [], []>} : vector<8x32xf32>, vector<32x128xf32>, vector<8x128xf32> -> vector<8x128xf32>
    %37 = arith.addf %34, %36 : vector<8x128xf32>
    %c0_18 = arith.constant 0 : index
    %c0_19 = arith.constant 0 : index
    %38 = vector.load %arg6[%c0_18, %c0_19] : memref<8x128xf32, #tpu.memory_space<vmem>>, vector<8x128xf32>
    tpu.vector_store %arg6[%c0_18, %c0_19], %37 {strides = array<i32>} : memref<8x128xf32, #tpu.memory_space<vmem>>, vector<8x128xf32>,
    return
  }
  func.func @transform_0(%arg0: i32, %arg1: i32) -> (i32, i32) {
    %c0_i32 = arith.constant 0 : i32
    %c0_i32_0 = arith.constant 0 : i32
    %c0_i32_1 = arith.constant 0 : i32
    return %c0_i32, %c0_i32_0 : i32, i32
  }
  func.func @transform_1(%arg0: i32, %arg1: i32) -> (i32, i32) {
    %c0_i32 = arith.constant 0 : i32
    %c0_i32_0 = arith.constant 0 : i32
    return %c0_i32, %arg1 : i32, i32
  }
  func.func @transform_2(%arg0: i32, %arg1: i32) -> (i32, i32) {
    %c0_i32 = arith.constant 0 : i32
    return %arg1, %arg0 : i32, i32
  }
  func.func @transform_3(%arg0: i32, %arg1: i32) -> (i32, i32) {
    %c0_i32 = arith.constant 0 : i32
    %c0_i32_0 = arith.constant 0 : i32
    return %c0_i32, %arg1 : i32, i32
  }
  func.func @transform_4(%arg0: i32, %arg1: i32) -> (i32, i32) {
    %c0_i32 = arith.constant 0 : i32
    %c0_i32_0 = arith.constant 0 : i32
    return %c0_i32, %arg0 : i32, i32
  }
}

</mosaic_0001>

<bundles_post_ra>
// kernel: tpu_custom_call.1
= control target key start
LH: loop header
LB: loop body
LE: loop exit
PB: predicated region body
PF: predicated region fallthrough
CT: control target
= control target key end

     0   :  { %9 = vsyncpa [#allocation3], 0  ;;  %s451_s0 = inlined_call_operand.hbm [shape: f32[8,16], index: 0, kind: input, shape index: {}]   ;;  %s452_s1 = inlined_call_operand.hbm [shape: f32[16,32], index: 1, kind: input, shape index: {}]   ;;  %s453_s2 = inlined_call_operand.hbm [shape: f32[32,128], index: 2, kind: input, shape index: {}]   ;;  %s454_s3 = inlined_call_operand.vmem [shape: f32[2,32], index: 3, kind: input, shape index: {}]   ;;  %s455_s4 = inlined_call_operand.hbm [shape: f32[8,128], index: 4, kind: output, shape index: {}]  }
   0x1   :  { %10 = vsyncpa [#allocation6], 0 }
   0x2   :  { %11 = vsyncpa [#allocation4], 0  ;;  %s400_s15 = smov [#allocation5]  }
   0x3   :  { %s27_s16 = sshll.u32 %s400_s15, 4  ;;  %s28_s16 = int_to_ptr.vmem [resolvable:$true] %s27_s16 }
   0x4   :  { %s322_s17 = scalar_lea.vmem %s28_s16, 256  ;;  %p327_p1 = scmp.lt.s32.totalorder %s28_s16, %s28_s16 }
   0x5   :  { %p323_p0 = scmp.ne.s32.totalorder %s28_s16, %s322_s17  ;;  %p328_p2 = scmp.lt.s32.totalorder %s322_s17, %s322_s17 }
   0x7   :  { %p329_p3 = por %p328_p2, %p327_p1 }
   0x9   :  { %p330_p4 = pnand %p329_p3, %p323_p0 }
   0xb   :  { %333 = shalt.err (!%p330_p4)
}
   0xc   :  { %s401_s18 = smov 128   ;;  %s402_s19 = smov 8  }
   0xd   :  { %33 = dma.hbm_to_vmem [thread:$0]  %s452_s1, 256, %s28_s16, [#allocation6], %s401_s18, %s401_s18, %s402_s19  }
   0xe   :  { %s403_s22 = smov [#allocation2]   ;;  %s404_s24 = smov [#allocation7]  }
   0xf   :  { %s18_s23 = sshll.u32 %s403_s22, 4  ;;  %s39_s25 = sshll.u32 %s404_s24, 4  ;;  %s19_s23 = int_to_ptr.vmem [resolvable:$true] %s18_s23  ;;  %s40_s25 = int_to_ptr.vmem [resolvable:$true] %s39_s25 }
  0x10   :  { %s342_s26 = scalar_lea.vmem %s19_s23, 128  ;;  %p347_p6 = scmp.lt.s32.totalorder %s19_s23, %s19_s23 }
  0x11   :  { %p343_p5 = scmp.ne.s32.totalorder %s19_s23, %s342_s26  ;;  %p348_p7 = scmp.lt.s32.totalorder %s342_s26, %s342_s26 }
  0x13   :  { %p349_p8 = por %p348_p7, %p347_p6 }
  0x15   :  { %p350_p9 = pnand %p349_p8, %p343_p5 }
  0x17   :  { %353 = shalt.err (!%p350_p9)
}
  0x18   :  { %21 = dma.hbm_to_vmem [thread:$0]  %s451_s0, 128, %s19_s23, [#allocation3]  }
  0x19   :  { %s362_s29 = scalar_lea.vmem %s40_s25, 512  ;;  %p367_p11 = scmp.lt.s32.totalorder %s40_s25, %s40_s25 }
  0x1a   :  { %p363_p10 = scmp.ne.s32.totalorder %s40_s25, %s362_s29  ;;  %p368_p12 = scmp.lt.s32.totalorder %s362_s29, %s362_s29 }
  0x1c   :  { %p369_p13 = por %p368_p12, %p367_p11 }
  0x1e   :  { %p370_p0 = pnand %p369_p13, %p363_p10 }
  0x20   :  { %373 = shalt.err (!%p370_p0)
}
  0x21   :  { %45 = dma.hbm_to_vmem [thread:$0]  %s453_s2, 512, %s40_s25, [#allocation6], %s401_s18, %s401_s18, %s402_s19  }
  0x22   :  { %394 = dma.done.wait [#allocation3], 128  }
  0x23   :  { %395 = vsyncadd [#allocation3], 4294967168 }
  0x24   :  { %396 = dma.done.wait [#allocation6], 768  }
  0x25   :  { %397 = vsyncadd [#allocation6], 4294966528  ;;  %v405_v0 = vmov 0.0   ;;  %vm406_vm0 = vmmov 0   ;;  %v64_v1 = vld [vmem:[#allocation5 + $0x8] sm:$0xff]  ;;  %v63_v2 = vld [vmem:[#allocation5] sm:$0xff]  ;;  %v169_v31 = vlaneseq }
  0x26   :  { %286 = vmatprep.subr.mxu0 %v405_v0  ;;  %290 = vmatprep.mubr.msk.f32.mxu0 %vm406_vm0, %v405_v0  ;;  %v62_v3 = vld [vmem:[#allocation2] sm:$0xff]  ;;  %vm65_vm1 = vcmask 130048   ;;  %v184_v4 = vld [vmem:[#allocation7 + $0x18] sm:$0xff]  ;;  %v183_v5 = vld [vmem:[#allocation7 + $0x10] sm:$0xff]  ;;  %vm139_vm2 = vcmask 261120   ;;  %s407_s5 = smov [#allocation8]  }
  0x27   :  { %293 = vmatprep.subr.mxu1 %v405_v0  ;;  %301 = vmatprep.mubr.msk.f32.mxu1 %vm406_vm0, %v405_v0  ;;  %v182_v6 = vld [vmem:[#allocation7 + $0x8] sm:$0xff]  ;;  %v181_v7 = vld [vmem:[#allocation7] sm:$0xff]  ;;  %v170_v32 = vshrl.u32 %v169_v31, 7  ;;  %s266_s6 = sshll.u32 %s407_s5, 4  ;;  %s267_s6 = int_to_ptr.vmem [resolvable:$true] %s266_s6 }
  0x28   :  { %287 = vmatpush3.msra.mxu0 %v64_v1  ;;  %294 = vmatpush3.msra.mxu1 %v184_v4  ;;  %v160_v33 = vld [vmem:[%s454_s3] sm:$0x3]  ;;  %s374_s3 = scalar_lea.vmem %s267_s6, 128  ;;  %p379_p2 = scmp.lt.s32.totalorder %s267_s6, %s267_s6 }
  0x29   :  { %288 = vmatprep.subr.mxu0 %v405_v0  ;;  %295 = vmatprep.subr.mxu1 %v405_v0  ;;  %v171_v36 = vsub.s32 0, %v170_v32  ;;  %v176_v40 = vsub.s32 1, %v170_v32  ;;  %p375_p1 = scmp.ne.s32.totalorder %s267_s6, %s374_s3  ;;  %p380_p3 = scmp.lt.s32.totalorder %s374_s3, %s374_s3 }
  0x2a   :  { %289 = vmatpush3.msra.mxu0 %v63_v2  ;;  %296 = vmatpush3.msra.mxu1 %v183_v5 }
  0x2b   :  { %291 = vmatmul.mubr.msk.f32.vlgmr.msra.gmra.mxu0 %vm65_vm1, %v62_v3  ;;  %297 = vmatprep.subr.mxu1 %v405_v0  ;;  %p381_p4 = por %p380_p3, %p379_p2 }
  0x2c   :  { %298 = vmatpush3.msra.mxu1 %v182_v6 }
  0x2d   :  { %299 = vmatprep.subr.mxu1 %v405_v0  ;;  %p382_p5 = pnand %p381_p4, %p375_p1 }
  0x2e   :  { %300 = vmatpush3.msra.mxu1 %v181_v7 }
  0xeb   :  { %v135_v8 = vpop.f32.mrf.mxu0 }
  0xec   :  { %v140_v9 = vsel %vm139_vm2, %v135_v8, 0.0  ;;  %v148_v10 = vmul.f32 %v135_v8, %v135_v8 }
  0xed   :  { %v141_v11 = vrot.slane %v140_v9, 4  ;;  %v292_v12 = vpop.f32.mrf.mxu0 }
  0xee   :  { %v149_v13 = vsel %vm139_vm2, %v148_v10, 0.0 }
  0xef   :  { %v142_v14 = vadd.f32 %v141_v11, %v140_v9  ;;  %v150_v15 = vrot.slane %v149_v13, 4 }
  0xf1   :  { %v143_v16 = vrot.slane %v142_v14, 2  ;;  %v151_v17 = vadd.f32 %v150_v15, %v149_v13 }
  0xf3   :  { %v144_v18 = vadd.f32 %v143_v16, %v142_v14  ;;  %v152_v19 = vrot.slane %v151_v17, 2 }
  0xf5   :  { %v145_v20 = vrot.slane %v144_v18, 1  ;;  %v153_v21 = vadd.f32 %v152_v19, %v151_v17 }
  0xf7   :  { %v146_v22 = vadd.f32 %v145_v20, %v144_v18  ;;  %v154_v23 = vrot.slane %v153_v21, 1 }
  0xf9   :  { %v147_v24 = vmul.f32 0.125, %v146_v22  ;;  %v155_v25 = vadd.f32 %v154_v23, %v153_v21 }
  0xfb   :  { %v156_v26 = vmul.f32 0.125, %v155_v25  ;;  %v157_v27 = vmul.f32 %v147_v24, %v147_v24 }
  0xfd   :  { %v158_v28 = vsub.f32 %v156_v26, %v157_v27 }
  0xff   :  { %v159_v29 = vmax.f32 %v158_v28, 0.0 }
 0x101   :  { %v161_v30 = vadd.f32 1e-05, %v159_v29 }
 0x103   :  { %312 = vrsqrt.f32 %v161_v30 }
 0x110   :  { %v313_v34 = vpop.eup %312 }
 0x111   :  { %v163_v35 = vmul.f32 %v313_v34, %v160_v33 }
 0x113   :  { %v164_v37 = vmul.f32 %v163_v35, %v147_v24  ;;  %v172_v39 = vrot.slane %v163_v35, %v171_v36 }
 0x115   :  { %v166_v38 = vrot.slane %v164_v37, 7  ;;  %v173_v42 = vmul.f32 %v172_v39, %v135_v8 }
 0x117   :  { %v168_v41 = vsub.f32 %v160_v33, %v166_v38 }
 0x119   :  { %v177_v43 = vrot.slane %v168_v41, %v176_v40 }
 0x11b   :  { %v178_v44 = vadd.f32 %v177_v43, %v173_v42 }
 0x11d   :  { %v179_v45 = vmax.f32 %v178_v44, 0.0 }
 0x11f   :  { %302 = vmatmul.mubr.msk.f32.vlgmr.msra.gmra.mxu1 %vm139_vm2, %v179_v45 }
 0x1df   :  { %v254_v46 = vpop.f32.mrf.mxu1 }
 0x1e0   :  { %259 = vst [vmem:[#allocation8] sm:$0xff] %v254_v46 }
 0x1e1   :  { %v303_v47 = vpop.f32.mrf.mxu1 }
 0x1e2   :  { %385 = shalt.err (!%p382_p5)
}
 0x1e3   :  { %269 = dma.vmem_to_hbm [thread:$0]  %s267_s6, 128, %s455_s4, [#allocation4]  }
 0x1e4   :  { %398 = dma.done.wait [#allocation4], 128  }
 0x1e5   :  { %399 = vsyncadd [#allocation4], 4294967168 }
 0x1e6   :  { %273 = vsyncpa [#allocation3], 1 }
 0x1e7   :  { %274 = vsyncpa [#allocation6], 1 }
 0x1e8   :  { %275 = vsyncpa [#allocation4], 1 }

</bundles_post_ra>
